<compile_context>
chip_gen: v6e
topology: v6e:2x2x1
jax: 0.10.0
libtpu: 0.0.40
codegen_flags: <defaults>
</compile_context>

<pallas_src>
import functools

import jax
import jax.numpy as jnp
from jax.experimental import pallas as pl
from jax.experimental.pallas import tpu as pltpu


# ----------------------------------------------------------------------------
# Tiling helpers
# ----------------------------------------------------------------------------
def _divisible_tile(n, target, mult):
    """Largest t <= target with n % t == 0 and t % mult == 0; else n (full)."""
    if n <= target:
        return n
    t = target - (target % mult)
    while t >= mult:
        if n % t == 0:
            return t
        t -= mult
    return n


def _row_tile(n, target=256):
    # 256 rows is a good compromise across v5e (16 MiB scoped VMEM) / v6e / v7x.
    return _divisible_tile(n, target, 8)


def _col_tile(n, target=512):
    return _divisible_tile(n, target, 128)


def _parallel(n_axes):
    return pltpu.CompilerParams(dimension_semantics=("parallel",) * n_axes)


def _ln_f32(x, g, b):
    xf = x.astype(jnp.float32)
    mean = jnp.mean(xf, axis=-1, keepdims=True)
    var = jnp.mean((xf - mean) ** 2, axis=-1, keepdims=True)
    return (xf - mean) * jax.lax.rsqrt(var + 1e-5) * g + b


# ----------------------------------------------------------------------------
# Fused LayerNorm + projection kernels
# ----------------------------------------------------------------------------
def ln_qkv_kernel(x_ref, g_ref, b_ref, wq_ref, wk_ref, wv_ref,
                  q_ref, k_ref, v_ref):
    h = _ln_f32(x_ref[...], g_ref[...], b_ref[...]).astype(x_ref.dtype)
    q_ref[...] = jnp.dot(h, wq_ref[...],
                         preferred_element_type=jnp.float32).astype(q_ref.dtype)
    k_ref[...] = jnp.dot(h, wk_ref[...],
                         preferred_element_type=jnp.float32).astype(k_ref.dtype)
    v_ref[...] = jnp.dot(h, wv_ref[...],
                         preferred_element_type=jnp.float32).astype(v_ref.dtype)


def ln_qkv(x2d, gamma, beta, wq, wk, wv):
    T, C = x2d.shape
    inner = wq.shape[1]
    tile = _row_tile(T)
    row = lambda i: (i, 0)
    rep = lambda i: (0, 0)
    return pl.pallas_call(
        ln_qkv_kernel,
        out_shape=(jax.ShapeDtypeStruct((T, inner), x2d.dtype),) * 3,
        grid=(T // tile,),
        in_specs=[pl.BlockSpec((tile, C), row),
                  pl.BlockSpec((1, C), rep), pl.BlockSpec((1, C), rep),
                  pl.BlockSpec((C, inner), rep), pl.BlockSpec((C, inner), rep),
                  pl.BlockSpec((C, inner), rep)],
        out_specs=[pl.BlockSpec((tile, inner), row)] * 3,
        compiler_params=_parallel(1),
    )(x2d, gamma.reshape(1, C), beta.reshape(1, C), wq, wk, wv)


def ln_q_kernel(x_ref, g_ref, b_ref, wq_ref, q_ref):
    h = _ln_f32(x_ref[...], g_ref[...], b_ref[...]).astype(x_ref.dtype)
    q_ref[...] = jnp.dot(h, wq_ref[...],
                         preferred_element_type=jnp.float32).astype(q_ref.dtype)


def ln_q(x2d, gamma, beta, wq):
    T, C = x2d.shape
    inner = wq.shape[1]
    tile = _row_tile(T)
    row = lambda i: (i, 0)
    rep = lambda i: (0, 0)
    return pl.pallas_call(
        ln_q_kernel,
        out_shape=jax.ShapeDtypeStruct((T, inner), x2d.dtype),
        grid=(T // tile,),
        in_specs=[pl.BlockSpec((tile, C), row),
                  pl.BlockSpec((1, C), rep), pl.BlockSpec((1, C), rep),
                  pl.BlockSpec((C, inner), rep)],
        out_specs=pl.BlockSpec((tile, inner), row),
        compiler_params=_parallel(1),
    )(x2d, gamma.reshape(1, C), beta.reshape(1, C), wq)


def kv_kernel(c_ref, wk_ref, wv_ref, k_ref, v_ref):
    c = c_ref[...]
    k_ref[...] = jnp.dot(c, wk_ref[...],
                         preferred_element_type=jnp.float32).astype(k_ref.dtype)
    v_ref[...] = jnp.dot(c, wv_ref[...],
                         preferred_element_type=jnp.float32).astype(v_ref.dtype)


def kv_proj(c2d, wk, wv):
    T, Cc = c2d.shape
    inner = wk.shape[1]
    tile = _row_tile(T)
    row = lambda i: (i, 0)
    rep = lambda i: (0, 0)
    return pl.pallas_call(
        kv_kernel,
        out_shape=(jax.ShapeDtypeStruct((T, inner), c2d.dtype),) * 2,
        grid=(T // tile,),
        in_specs=[pl.BlockSpec((tile, Cc), row),
                  pl.BlockSpec((Cc, inner), rep), pl.BlockSpec((Cc, inner), rep)],
        out_specs=[pl.BlockSpec((tile, inner), row)] * 2,
        compiler_params=_parallel(1),
    )(c2d, wk, wv)


# ----------------------------------------------------------------------------
# Output projection + residual add (fused)
# ----------------------------------------------------------------------------
def proj_residual_kernel(x_ref, w_ref, b_ref, r_ref, o_ref):
    y = jnp.dot(x_ref[...], w_ref[...], preferred_element_type=jnp.float32)
    o_ref[...] = (y + b_ref[...] + r_ref[...].astype(jnp.float32)).astype(o_ref.dtype)


def proj_residual(x2d, w, b, res2d):
    T, Cin = x2d.shape
    Cout = w.shape[1]
    tile = _row_tile(T)
    row = lambda i: (i, 0)
    rep = lambda i: (0, 0)
    return pl.pallas_call(
        proj_residual_kernel,
        out_shape=jax.ShapeDtypeStruct((T, Cout), x2d.dtype),
        grid=(T // tile,),
        in_specs=[pl.BlockSpec((tile, Cin), row),
                  pl.BlockSpec((Cin, Cout), rep), pl.BlockSpec((1, Cout), rep),
                  pl.BlockSpec((tile, Cout), row)],
        out_specs=pl.BlockSpec((tile, Cout), row),
        compiler_params=_parallel(1),
    )(x2d, w, b.reshape(1, Cout), res2d)


# ----------------------------------------------------------------------------
# Flash attention core: grid (batch, q-tiles, kv-tiles), heads lane-sliced
# ----------------------------------------------------------------------------
def attn_flash_kernel(q_ref, k_ref, v_ref, o_ref, m_sc, l_sc, acc_sc,
                      *, heads, dh, scale):
    ki = pl.program_id(2)

    @pl.when(ki == 0)
    def _():
        m_sc[...] = jnp.full_like(m_sc, -jnp.inf)
        l_sc[...] = jnp.zeros_like(l_sc)
        acc_sc[...] = jnp.zeros_like(acc_sc)

    q = q_ref[0]                       # (tq, heads*dh), model dtype
    k = k_ref[0]                       # (tk, heads*dh)
    v = v_ref[0]                       # (tk, heads*dh)
    for h in range(heads):             # static unroll; heads is small
        sl = slice(h * dh, (h + 1) * dh)
        qh, kh, vh = q[:, sl], k[:, sl], v[:, sl]
        s = jax.lax.dot_general(qh, kh, (((1,), (1,)), ((), ())),
                                preferred_element_type=jnp.float32) * scale
        m_prev = m_sc[h]                                   # (tq, 1) f32
        m_new = jnp.maximum(m_prev, jnp.max(s, axis=-1, keepdims=True))
        alpha = jnp.exp(m_prev - m_new)
        p = jnp.exp(s - m_new)
        l_sc[h] = alpha * l_sc[h] + jnp.sum(p, axis=-1, keepdims=True)
        acc_sc[h] = alpha * acc_sc[h] + jnp.dot(
            p.astype(vh.dtype), vh, preferred_element_type=jnp.float32)
        m_sc[h] = m_new

    @pl.when(ki == pl.num_programs(2) - 1)
    def _():
        # approx=True moves the divide to the EUP; kept exact here to stay
        # within the strict f32 correctness tolerance of this test.
        outs = [acc_sc[h] * pl.reciprocal(l_sc[h], approx=False)
                for h in range(heads)]
        # Lane-dense (tq, heads*dh) store: heads folded into the lane axis.
        o_ref[0] = jnp.concatenate(outs, axis=-1).astype(o_ref.dtype)


def attention_core(q, k, v, heads, dh):
    B, N, inner = q.shape
    M = k.shape[1]
    tq = _row_tile(N, 256)
    tk = _row_tile(M, 256)
    kern = functools.partial(attn_flash_kernel, heads=heads, dh=dh,
                             scale=dh ** -0.5)
    return pl.pallas_call(
        kern,
        out_shape=jax.ShapeDtypeStruct((B, N, inner), q.dtype),
        grid=(B, N // tq, M // tk),
        in_specs=[pl.BlockSpec((1, tq, inner), lambda b, qi, ki: (b, qi, 0)),
                  pl.BlockSpec((1, tk, inner), lambda b, qi, ki: (b, ki, 0)),
                  pl.BlockSpec((1, tk, inner), lambda b, qi, ki: (b, ki, 0))],
        out_specs=pl.BlockSpec((1, tq, inner), lambda b, qi, ki: (b, qi, 0)),
        scratch_shapes=[pltpu.VMEM((heads, tq, 1), jnp.float32),
                        pltpu.VMEM((heads, tq, 1), jnp.float32),
                        pltpu.VMEM((heads, tq, dh), jnp.float32)],
        compiler_params=pltpu.CompilerParams(
            dimension_semantics=("parallel", "parallel", "arbitrary")),
    )(q, k, v)


# ----------------------------------------------------------------------------
# Fused LayerNorm + GEGLU + output projection + residual (feed-forward block)
# ----------------------------------------------------------------------------
def ff_fused_kernel(x_ref, g_ref, b_ref, wa_ref, ba_ref, wg_ref, bg_ref,
                    wo_ref, bo_ref, res_ref, o_ref, acc_ref):
    kk = pl.program_id(1)

    @pl.when(kk == 0)
    def _():
        acc_ref[...] = jnp.zeros_like(acc_ref)

    # LayerNorm (f32 statistics), recomputed per ff_inner tile; cheap VPU work
    # relative to the three matmuls it enables us to fuse.
    h = _ln_f32(x_ref[...], g_ref[...], b_ref[...]).astype(x_ref.dtype)
    a = jnp.dot(h, wa_ref[...], preferred_element_type=jnp.float32) + ba_ref[...]
    gate = jnp.dot(h, wg_ref[...], preferred_element_type=jnp.float32) + bg_ref[...]
    u = (a * jax.nn.gelu(gate, approximate=False)).astype(wo_ref.dtype)
    acc_ref[...] += jnp.dot(u, wo_ref[...], preferred_element_type=jnp.float32)

    @pl.when(kk == pl.num_programs(1) - 1)
    def _():
        o_ref[...] = (acc_ref[...] + bo_ref[...]
                      + res_ref[...].astype(jnp.float32)).astype(o_ref.dtype)


def ff_fused(x2d, gamma, beta, wa, ba, wg, bg, wo, bo, res2d):
    T, C = x2d.shape
    Fi = wa.shape[1]
    tile_t = _row_tile(T)
    tile_f = _col_tile(Fi)
    row = lambda i, kk: (i, 0)
    rep = lambda i, kk: (0, 0)
    colw = lambda i, kk: (0, kk)   # (C, tile_f) / (1, tile_f) blocks
    colo = lambda i, kk: (kk, 0)   # (tile_f, C) blocks of the out projection
    return pl.pallas_call(
        ff_fused_kernel,
        out_shape=jax.ShapeDtypeStruct((T, C), x2d.dtype),
        grid=(T // tile_t, Fi // tile_f),
        in_specs=[pl.BlockSpec((tile_t, C), row),
                  pl.BlockSpec((1, C), rep), pl.BlockSpec((1, C), rep),
                  pl.BlockSpec((C, tile_f), colw), pl.BlockSpec((1, tile_f), colw),
                  pl.BlockSpec((C, tile_f), colw), pl.BlockSpec((1, tile_f), colw),
                  pl.BlockSpec((tile_f, C), colo), pl.BlockSpec((1, C), rep),
                  pl.BlockSpec((tile_t, C), row)],
        out_specs=pl.BlockSpec((tile_t, C), row),
        scratch_shapes=[pltpu.VMEM((tile_t, C), jnp.float32)],
        compiler_params=pltpu.CompilerParams(
            dimension_semantics=("parallel", "arbitrary")),
    )(x2d, gamma.reshape(1, C), beta.reshape(1, C),
      wa, ba.reshape(1, Fi), wg, bg.reshape(1, Fi),
      wo, bo.reshape(1, C), res2d)


# ----------------------------------------------------------------------------
# Module wrappers (only reshapes in plain JAX; no head transposes)
# ----------------------------------------------------------------------------
def self_attention_block(x, p, ln_g, ln_b, heads):
    B, N, C = x.shape
    x2d = x.reshape(B * N, C)
    q2d, k2d, v2d = ln_qkv(x2d, ln_g, ln_b, p["wq"], p["wk"], p["wv"])
    inner = p["wq"].shape[1]
    dh = inner // heads
    o = attention_core(q2d.reshape(B, N, inner), k2d.reshape(B, N, inner),
                       v2d.reshape(B, N, inner), heads, dh)
    return proj_residual(o.reshape(B * N, inner), p["wo"], p["bo"],
                         x2d).reshape(B, N, C)


def cross_attention_block(x, context, p, ln_g, ln_b, heads):
    B, N, C = x.shape
    Bc, M, Cc = context.shape
    x2d = x.reshape(B * N, C)
    q2d = ln_q(x2d, ln_g, ln_b, p["wq"])
    k2d, v2d = kv_proj(context.reshape(Bc * M, Cc), p["wk"], p["wv"])
    inner = p["wq"].shape[1]
    dh = inner // heads
    o = attention_core(q2d.reshape(B, N, inner), k2d.reshape(Bc, M, inner),
                       v2d.reshape(Bc, M, inner), heads, dh)
    return proj_residual(o.reshape(B * N, inner), p["wo"], p["bo"],
                         x2d).reshape(B, N, C)


def basic_transformer_block(x, context, params, heads):
    B, N, C = x.shape
    # attn1 (self) + residual
    x = self_attention_block(x, params["attn1"], params["ln1_g"],
                             params["ln1_b"], heads)
    # attn2 (cross) + residual
    x = cross_attention_block(x, context, params["attn2"], params["ln2_g"],
                              params["ln2_b"], heads)
    # LayerNorm + GEGLU feed-forward + residual (dropout p=0 -> identity)
    x2d = x.reshape(B * N, C)
    out = ff_fused(x2d, params["ln3_g"], params["ln3_b"],
                   params["ff_wa"], params["ff_ba"],
                   params["ff_wg"], params["ff_bg"],
                   params["ff_wo"], params["ff_bo"], x2d)
    return out.reshape(B, N, C)


# ----------------------------------------------------------------------------
# Pure-JAX reference (for correctness check)
# ----------------------------------------------------------------------------
def _ref_ln(x, g, b):
    m = jnp.mean(x, -1, keepdims=True)
    v = jnp.mean((x - m) ** 2, -1, keepdims=True)
    return (x - m) * jax.lax.rsqrt(v + 1e-5) * g + b


def _ref_attn(x, ctx, p, heads):
    B, N, _ = x.shape
    ctx = x if ctx is None else ctx
    M = ctx.shape[1]
    q = x @ p["wq"]
    k = ctx @ p["wk"]
    v = ctx @ p["wv"]
    inner = q.shape[-1]
    dh = inner // heads
    qh = q.reshape(B, N, heads, dh).transpose(0, 2, 1, 3)
    kh = k.reshape(B, M, heads, dh).transpose(0, 2, 1, 3)
    vh = v.reshape(B, M, heads, dh).transpose(0, 2, 1, 3)
    s = jnp.einsum("bhid,bhjd->bhij", qh, kh) * (dh ** -0.5)
    a = jax.nn.softmax(s, axis=-1)
    o = jnp.einsum("bhij,bhjd->bhid", a, vh)
    o = o.transpose(0, 2, 1, 3).reshape(B, N, inner)
    return o @ p["wo"] + p["bo"]


def _ref_block(x, ctx, params, heads):
    x = _ref_attn(_ref_ln(x, params["ln1_g"], params["ln1_b"]), None,
                  params["attn1"], heads) + x
    x = _ref_attn(_ref_ln(x, params["ln2_g"], params["ln2_b"]), ctx,
                  params["attn2"], heads) + x
    h = _ref_ln(x, params["ln3_g"], params["ln3_b"])
    a = h @ params["ff_wa"] + params["ff_ba"]
    g = h @ params["ff_wg"] + params["ff_bg"]
    ff = (a * jax.nn.gelu(g, approximate=False)) @ params["ff_wo"] + params["ff_bo"]
    return ff + x


# ----------------------------------------------------------------------------
# Deterministic parameter construction
# ----------------------------------------------------------------------------
def init_params(key, dim, heads, d_head, context_dim, ff_mult=4):
    inner = heads * d_head
    ff_inner = dim * ff_mult
    ks = list(jax.random.split(key, 16))

    def w(k, shape, scale=0.02):
        return jax.random.normal(k, shape, jnp.float32) * scale

    def attn_params(kq, kk, kv, ko, ctx_dim):
        # to_q / to_k / to_v are bias-free (matches SD CrossAttention).
        return dict(
            wq=w(kq, (dim, inner)),
            wk=w(kk, (ctx_dim, inner)),
            wv=w(kv, (ctx_dim, inner)),
            wo=w(ko, (inner, dim)), bo=jnp.full((dim,), 0.01, jnp.float32),
        )

    params = dict(
        ln1_g=jnp.ones((dim,), jnp.float32), ln1_b=jnp.zeros((dim,), jnp.float32),
        ln2_g=jnp.ones((dim,), jnp.float32), ln2_b=jnp.zeros((dim,), jnp.float32),
        ln3_g=jnp.ones((dim,), jnp.float32), ln3_b=jnp.zeros((dim,), jnp.float32),
        attn1=attn_params(ks[0], ks[1], ks[2], ks[3], dim),
        attn2=attn_params(ks[4], ks[5], ks[6], ks[7], context_dim),
        ff_wa=w(ks[8], (dim, ff_inner)), ff_ba=jnp.full((ff_inner,), 0.01, jnp.float32),
        ff_wg=w(ks[9], (dim, ff_inner)), ff_bg=jnp.full((ff_inner,), -0.01, jnp.float32),
        ff_wo=w(ks[10], (ff_inner, dim)), ff_bo=jnp.zeros((dim,), jnp.float32),
    )
    return params


# ----------------------------------------------------------------------------
if __name__ == "__main__":
    B, N, dim = 2, 8, 32
    n_heads, d_head = 4, 8
    M, context_dim = 8, 16

    key = jax.random.PRNGKey(0)
    kx, kc, kp = jax.random.split(key, 3)
    x = jax.random.normal(kx, (B, N, dim), jnp.float32)
    context = jax.random.normal(kc, (B, M, context_dim), jnp.float32)
    params = init_params(kp, dim, n_heads, d_head, context_dim)

    out = basic_transformer_block(x, context, params, n_heads)
    out = jax.block_until_ready(out)

    ref = _ref_block(x, context, params, n_heads)
    assert out.shape == (B, N, dim)
    assert jnp.allclose(out, ref, atol=1e-4, rtol=1e-4), \
        f"max abs err {jnp.max(jnp.abs(out - ref))}"

    print("KERNEL_OK")
</pallas_src>

<mosaic_0001>
module attributes {stable_mosaic.version = 11 : i64} {
  func.func @ln_qkv_kernel(%arg0: i32, %arg1: memref<16x32xf32, #tpu.memory_space<vmem>>, %arg2: memref<1x32xf32, #tpu.memory_space<vmem>>, %arg3: memref<1x32xf32, #tpu.memory_space<vmem>>, %arg4: memref<32x32xf32, #tpu.memory_space<vmem>>, %arg5: memref<32x32xf32, #tpu.memory_space<vmem>>, %arg6: memref<32x32xf32, #tpu.memory_space<vmem>>, %arg7: memref<16x32xf32, #tpu.memory_space<vmem>>, %arg8: memref<16x32xf32, #tpu.memory_space<vmem>>, %arg9: memref<16x32xf32, #tpu.memory_space<vmem>>) attributes {dimension_semantics = [#tpu.dimension_semantics<parallel>], iteration_bounds = array<i64: 1>, scalar_prefetch = 0 : i64, scratch_operands = 0 : i64, tpu.core_type = #tpu.core_type<tc>, window_params = [{transform_indices = @transform_0, window_bounds = array<i64: 16, 32>}, {pipeline_mode = #tpu.pipeline_mode<synchronous>, transform_indices = @transform_1, window_bounds = array<i64: 1, 32>}, {pipeline_mode = #tpu.pipeline_mode<synchronous>, transform_indices = @transform_2, window_bounds = array<i64: 1, 32>}, {pipeline_mode = #tpu.pipeline_mode<synchronous>, transform_indices = @transform_3, window_bounds = array<i64: 32, 32>}, {pipeline_mode = #tpu.pipeline_mode<synchronous>, transform_indices = @transform_4, window_bounds = array<i64: 32, 32>}, {pipeline_mode = #tpu.pipeline_mode<synchronous>, transform_indices = @transform_5, window_bounds = array<i64: 32, 32>}, {transform_indices = @transform_6, window_bounds = array<i64: 16, 32>}, {transform_indices = @transform_7, window_bounds = array<i64: 16, 32>}, {transform_indices = @transform_8, window_bounds = array<i64: 16, 32>}]} {
    %c0 = arith.constant 0 : index
    %c0_0 = arith.constant 0 : index
    %0 = vector.load %arg1[%c0, %c0_0] : memref<16x32xf32, #tpu.memory_space<vmem>>, vector<16x32xf32>
    %c0_1 = arith.constant 0 : index
    %c0_2 = arith.constant 0 : index
    %1 = vector.load %arg2[%c0_1, %c0_2] : memref<1x32xf32, #tpu.memory_space<vmem>>, vector<1x32xf32>
    %c0_3 = arith.constant 0 : index
    %c0_4 = arith.constant 0 : index
    %2 = vector.load %arg3[%c0_3, %c0_4] : memref<1x32xf32, #tpu.memory_space<vmem>>, vector<1x32xf32>
    %cst = arith.constant dense<0.000000e+00> : vector<16xf32>
    %3 = vector.multi_reduction <add>, %0, %cst [1] : vector<16x32xf32> to vector<16xf32>
    %4 = vector.shape_cast %3 : vector<16xf32> to vector<16x1xf32>
    %cst_5 = arith.constant 3.200000e+01 : f32
    %5 = vector.broadcast %cst_5 : f32 to vector<16x1xf32>
    %6 = arith.divf %4, %5 : vector<16x1xf32>
    %7 = vector.broadcast %6 : vector<16x1xf32> to vector<16x32xf32>
    %8 = arith.subf %0, %7 : vector<16x32xf32>
    %9 = arith.mulf %8, %8 : vector<16x32xf32>
    %cst_6 = arith.constant dense<0.000000e+00> : vector<16xf32>
    %10 = vector.multi_reduction <add>, %9, %cst_6 [1] : vector<16x32xf32> to vector<16xf32>
    %11 = vector.shape_cast %10 : vector<16xf32> to vector<16x1xf32>
    %cst_7 = arith.constant 3.200000e+01 : f32
    %12 = vector.broadcast %cst_7 : f32 to vector<16x1xf32>
    %13 = arith.divf %11, %12 : vector<16x1xf32>
    %14 = vector.broadcast %6 : vector<16x1xf32> to vector<16x32xf32>
    %15 = arith.subf %0, %14 : vector<16x32xf32>
    %cst_8 = arith.constant 9.99999974E-6 : f32
    %16 = vector.broadcast %cst_8 : f32 to vector<16x1xf32>
    %17 = arith.addf %13, %16 : vector<16x1xf32>
    %18 = math.rsqrt %17 : vector<16x1xf32>
    %19 = vector.broadcast %18 : vector<16x1xf32> to vector<16x32xf32>
    %20 = arith.mulf %15, %19 : vector<16x32xf32>
    %21 = vector.broadcast %1 : vector<1x32xf32> to vector<16x32xf32>
    %22 = arith.mulf %20, %21 : vector<16x32xf32>
    %23 = vector.broadcast %2 : vector<1x32xf32> to vector<16x32xf32>
    %24 = arith.addf %22, %23 : vector<16x32xf32>
    %c0_9 = arith.constant 0 : index
    %c0_10 = arith.constant 0 : index
    %25 = vector.load %arg4[%c0_9, %c0_10] : memref<32x32xf32, #tpu.memory_space<vmem>>, vector<32x32xf32>
    %cst_11 = arith.constant dense<0.000000e+00> : vector<16x32xf32>
    %26 = tpu.matmul %24, %25, %cst_11 {dimension_numbers = #tpu.dot_dimension_numbers<[1], [0], [0], [1], [0, 0, 1, 1], [], []>} : vector<16x32xf32>, vector<32x32xf32>, vector<16x32xf32> -> vector<16x32xf32>
    %c0_12 = arith.constant 0 : index
    %c0_13 = arith.constant 0 : index
    %27 = vector.load %arg7[%c0_12, %c0_13] : memref<16x32xf32, #tpu.memory_space<vmem>>, vector<16x32xf32>
    tpu.vector_store %arg7[%c0_12, %c0_13], %26 {strides = array<i32>} : memref<16x32xf32, #tpu.memory_space<vmem>>, vector<16x32xf32>,
    %c0_14 = arith.constant 0 : index
    %c0_15 = arith.constant 0 : index
    %28 = vector.load %arg5[%c0_14, %c0_15] : memref<32x32xf32, #tpu.memory_space<vmem>>, vector<32x32xf32>
    %cst_16 = arith.constant dense<0.000000e+00> : vector<16x32xf32>
    %29 = tpu.matmul %24, %28, %cst_16 {dimension_numbers = #tpu.dot_dimension_numbers<[1], [0], [0], [1], [0, 0, 1, 1], [], []>} : vector<16x32xf32>, vector<32x32xf32>, vector<16x32xf32> -> vector<16x32xf32>
    %c0_17 = arith.constant 0 : index
    %c0_18 = arith.constant 0 : index
    %30 = vector.load %arg8[%c0_17, %c0_18] : memref<16x32xf32, #tpu.memory_space<vmem>>, vector<16x32xf32>
    tpu.vector_store %arg8[%c0_17, %c0_18], %29 {strides = array<i32>} : memref<16x32xf32, #tpu.memory_space<vmem>>, vector<16x32xf32>,
    %c0_19 = arith.constant 0 : index
    %c0_20 = arith.constant 0 : index
    %31 = vector.load %arg6[%c0_19, %c0_20] : memref<32x32xf32, #tpu.memory_space<vmem>>, vector<32x32xf32>
    %cst_21 = arith.constant dense<0.000000e+00> : vector<16x32xf32>
    %32 = tpu.matmul %24, %31, %cst_21 {dimension_numbers = #tpu.dot_dimension_numbers<[1], [0], [0], [1], [0, 0, 1, 1], [], []>} : vector<16x32xf32>, vector<32x32xf32>, vector<16x32xf32> -> vector<16x32xf32>
    %c0_22 = arith.constant 0 : index
    %c0_23 = arith.constant 0 : index
    %33 = vector.load %arg9[%c0_22, %c0_23] : memref<16x32xf32, #tpu.memory_space<vmem>>, vector<16x32xf32>
    tpu.vector_store %arg9[%c0_22, %c0_23], %32 {strides = array<i32>} : memref<16x32xf32, #tpu.memory_space<vmem>>, vector<16x32xf32>,
    return
  }
  func.func @transform_0(%arg0: i32) -> (i32, i32) {
    %c0_i32 = arith.constant 0 : i32
    %c0_i32_0 = arith.constant 0 : i32
    return %arg0, %c0_i32 : i32, i32
  }
  func.func @transform_1(%arg0: i32) -> (i32, i32) {
    %c0_i32 = arith.constant 0 : i32
    %c0_i32_0 = arith.constant 0 : i32
    %c0_i32_1 = arith.constant 0 : i32
    return %c0_i32, %c0_i32_0 : i32, i32
  }
  func.func @transform_2(%arg0: i32) -> (i32, i32) {
    %c0_i32 = arith.constant 0 : i32
    %c0_i32_0 = arith.constant 0 : i32
    %c0_i32_1 = arith.constant 0 : i32
    return %c0_i32, %c0_i32_0 : i32, i32
  }
  func.func @transform_3(%arg0: i32) -> (i32, i32) {
    %c0_i32 = arith.constant 0 : i32
    %c0_i32_0 = arith.constant 0 : i32
    %c0_i32_1 = arith.constant 0 : i32
    return %c0_i32, %c0_i32_0 : i32, i32
  }
  func.func @transform_4(%arg0: i32) -> (i32, i32) {
    %c0_i32 = arith.constant 0 : i32
    %c0_i32_0 = arith.constant 0 : i32
    %c0_i32_1 = arith.constant 0 : i32
    return %c0_i32, %c0_i32_0 : i32, i32
  }
  func.func @transform_5(%arg0: i32) -> (i32, i32) {
    %c0_i32 = arith.constant 0 : i32
    %c0_i32_0 = arith.constant 0 : i32
    %c0_i32_1 = arith.constant 0 : i32
    return %c0_i32, %c0_i32_0 : i32, i32
  }
  func.func @transform_6(%arg0: i32) -> (i32, i32) {
    %c0_i32 = arith.constant 0 : i32
    %c0_i32_0 = arith.constant 0 : i32
    return %arg0, %c0_i32 : i32, i32
  }
  func.func @transform_7(%arg0: i32) -> (i32, i32) {
    %c0_i32 = arith.constant 0 : i32
    %c0_i32_0 = arith.constant 0 : i32
    return %arg0, %c0_i32 : i32, i32
  }
  func.func @transform_8(%arg0: i32) -> (i32, i32) {
    %c0_i32 = arith.constant 0 : i32
    %c0_i32_0 = arith.constant 0 : i32
    return %arg0, %c0_i32 : i32, i32
  }
}

</mosaic_0001>

<bundles_post_ra>
// kernel: tpu_custom_call.1
= control target key start
LH: loop header
LB: loop body
LE: loop exit
PB: predicated region body
PF: predicated region fallthrough
CT: control target
= control target key end

     0   :  { %14 = vsyncpa [#allocation3], 0  ;;  %s770_s0 = inlined_call_operand.hbm [shape: f32[16,32], index: 0, kind: input, shape index: {}]   ;;  %s771_s1 = inlined_call_operand.vmem [shape: f32[1,32], index: 1, kind: input, shape index: {}]   ;;  %s772_s2 = inlined_call_operand.vmem [shape: f32[1,32], index: 2, kind: input, shape index: {}]   ;;  %s773_s3 = inlined_call_operand.hbm [shape: f32[32,32], index: 3, kind: input, shape index: {}]   ;;  %s774_s4 = inlined_call_operand.hbm [shape: f32[32,32], index: 4, kind: input, shape index: {}]   ;;  %s775_s5 = inlined_call_operand.hbm [shape: f32[32,32], index: 5, kind: input, shape index: {}]   ;;  %s776_s6 = inlined_call_operand.hbm [shape: f32[16,32], index: 6, kind: output, shape index: {0}]   ;;  %s777_s7 = inlined_call_operand.hbm [shape: f32[16,32], index: 7, kind: output, shape index: {1}]   ;;  %s778_s8 = inlined_call_operand.hbm [shape: f32[16,32], index: 8, kind: output, shape index: {2}]  }
   0x1   :  { %15 = vsyncpa [#allocation6], 0 }
   0x2   :  { %16 = vsyncpa [#allocation9], 0 }
   0x3   :  { %17 = vsyncpa [#allocation4], 0 }
   0x4   :  { %18 = vsyncpa [#allocation12], 0  ;;  %s652_s27 = smov [#allocation5]   ;;  %s653_s29 = smov [#allocation2]  }
   0x5   :  { %s40_s28 = sshll.u32 %s652_s27, 4  ;;  %s24_s30 = sshll.u32 %s653_s29, 4  ;;  %s41_s28 = int_to_ptr.vmem [resolvable:$true] %s40_s28  ;;  %s25_s30 = int_to_ptr.vmem [resolvable:$true] %s24_s30 }
   0x6   :  { %s510_s9 = scalar_lea.vmem %s41_s28, 512  ;;  %p515_p1 = scmp.lt.s32.totalorder %s41_s28, %s41_s28 }
   0x7   :  { %p511_p0 = scmp.ne.s32.totalorder %s41_s28, %s510_s9  ;;  %p516_p2 = scmp.lt.s32.totalorder %s510_s9, %s510_s9 }
   0x9   :  { %p517_p3 = por %p516_p2, %p515_p1 }
   0xb   :  { %p518_p4 = pnand %p517_p3, %p511_p0 }
   0xd   :  { %521 = shalt.err (!%p518_p4)
}
   0xe   :  { %s654_s10 = smov 128   ;;  %s655_s11 = smov 8  }
   0xf   :  { %46 = dma.hbm_to_vmem [thread:$0]  %s773_s3, 512, %s41_s28, [#allocation6], %s654_s10, %s654_s10, %s655_s11  }
  0x10   :  { %s530_s14 = scalar_lea.vmem %s25_s30, 256  ;;  %p535_p6 = scmp.lt.s32.totalorder %s25_s30, %s25_s30 }
  0x11   :  { %p531_p5 = scmp.ne.s32.totalorder %s25_s30, %s530_s14  ;;  %p536_p7 = scmp.lt.s32.totalorder %s530_s14, %s530_s14 }
  0x13   :  { %p537_p8 = por %p536_p7, %p535_p6 }
  0x15   :  { %p538_p9 = pnand %p537_p8, %p531_p5 }
  0x17   :  { %541 = shalt.err (!%p538_p9)
}
  0x18   :  { %30 = dma.hbm_to_vmem [thread:$0]  %s770_s0, 256, %s25_s30, [#allocation3], %s654_s10, %s654_s10, %s655_s11  }
  0x19   :  { %s656_s17 = smov [#allocation7]   ;;  %s657_s19 = smov [#allocation8]  }
  0x1a   :  { %s52_s18 = sshll.u32 %s656_s17, 4  ;;  %s64_s20 = sshll.u32 %s657_s19, 4  ;;  %s53_s18 = int_to_ptr.vmem [resolvable:$true] %s52_s18  ;;  %s65_s20 = int_to_ptr.vmem [resolvable:$true] %s64_s20 }
  0x1b   :  { %s550_s3 = scalar_lea.vmem %s53_s18, 512  ;;  %p555_p11 = scmp.lt.s32.totalorder %s53_s18, %s53_s18 }
  0x1c   :  { %p551_p10 = scmp.ne.s32.totalorder %s53_s18, %s550_s3  ;;  %p556_p12 = scmp.lt.s32.totalorder %s550_s3, %s550_s3 }
  0x1e   :  { %p557_p13 = por %p556_p12, %p555_p11 }
  0x20   :  { %p558_p0 = pnand %p557_p13, %p551_p10 }
  0x22   :  { %561 = shalt.err (!%p558_p0)
}
  0x23   :  { %58 = dma.hbm_to_vmem [thread:$0]  %s774_s4, 512, %s53_s18, [#allocation6], %s654_s10, %s654_s10, %s655_s11  }
  0x24   :  { %s570_s0 = scalar_lea.vmem %s65_s20, 512  ;;  %p575_p2 = scmp.lt.s32.totalorder %s65_s20, %s65_s20 }
  0x25   :  { %p571_p1 = scmp.ne.s32.totalorder %s65_s20, %s570_s0  ;;  %p576_p3 = scmp.lt.s32.totalorder %s570_s0, %s570_s0 }
  0x27   :  { %p577_p4 = por %p576_p3, %p575_p2 }
  0x29   :  { %p578_p5 = pnand %p577_p4, %p571_p1 }
  0x2b   :  { %581 = shalt.err (!%p578_p5)
}
  0x2c   :  { %70 = dma.hbm_to_vmem [thread:$0]  %s775_s5, 512, %s65_s20, [#allocation9], %s654_s10, %s654_s10, %s655_s11  }
  0x2d   :  { %642 = dma.done.wait [#allocation3], 256  }
  0x2e   :  { %643 = vsyncadd [#allocation3], 4294967040 }
  0x2f   :  { %644 = dma.done.wait [#allocation6], 1024  }
  0x30   :  { %645 = vsyncadd [#allocation6], 4294966272 }
  0x31   :  { %646 = dma.done.wait [#allocation9], 512  }
  0x32   :  { %647 = vsyncadd [#allocation9], 4294966784  ;;  %vm87_vm0 = vcmask 261120   ;;  %v83_v0 = vld [vmem:[#allocation2] sm:$0xff]  ;;  %v84_v1 = vld [vmem:[#allocation2 + $0x8] sm:$0xff]  ;;  %s659_s27 = smov [#allocation10]  }
  0x33   :  { %v88_v2 = vsel %vm87_vm0, %v83_v0, 0.0  ;;  %v91_v3 = vsel %vm87_vm0, %v84_v1, 0.0  ;;  %v134_v14 = vld [vmem:[#allocation5 + $0x18] sm:$0xff]  ;;  %v133_v16 = vld [vmem:[#allocation5 + $0x10] sm:$0xff]  ;;  %v132_v18 = vld [vmem:[#allocation5 + $0x8] sm:$0xff]  ;;  %s385_s28 = sshll.u32 %s659_s27, 4  ;;  %s386_s28 = int_to_ptr.vmem [resolvable:$true] %s385_s28 }
  0x34   :  { %89 = vadd.xlane.f32.xlu0 %v88_v2  ;;  %v221_v15 = vld [vmem:[#allocation7 + $0x18] sm:$0xff]  ;;  %456 = vmatprep.subr.mxu0 %v134_v14  ;;  %v220_v17 = vld [vmem:[#allocation7 + $0x10] sm:$0xff]  ;;  %v219_v19 = vld [vmem:[#allocation7 + $0x8] sm:$0xff] }
  0x35   :  { %467 = vmatprep.subr.mxu1 %v221_v15  ;;  %457 = vmatpush3.msra.mxu0 %v134_v14  ;;  %v131_v20 = vld [vmem:[#allocation5] sm:$0xff]  ;;  %v302_v22 = vld [vmem:[#allocation8 + $0x18] sm:$0xff]  ;;  %v430_v30 = vld [vmem:[%s771_s1] ss:$0 sm:$0xff]  ;;  %s658_s1 = smov [#allocation11]  }
  0x36   :  { %468 = vmatpush3.msra.mxu1 %v221_v15  ;;  %458 = vmatprep.subr.mxu0 %v133_v16  ;;  %v218_v21 = vld [vmem:[#allocation7] sm:$0xff]  ;;  %v431_v32 = vld [vmem:[%s772_s2] ss:$0 sm:$0xff]  ;;  %v300_v40 = vld [vmem:[#allocation8 + $0x8] sm:$0xff]  ;;  %s397_s2 = sshll.u32 %s658_s1, 4  ;;  %s398_s2 = int_to_ptr.vmem [resolvable:$true] %s397_s2 }
  0x37   :  { %469 = vmatprep.subr.mxu1 %v220_v17  ;;  %459 = vmatpush3.msra.mxu0 %v133_v16  ;;  %v301_v39 = vld [vmem:[#allocation8 + $0x10] sm:$0xff]  ;;  %v299_v41 = vld [vmem:[#allocation8] sm:$0xff]  ;;  %s582_s29 = scalar_lea.vmem %s398_s2, 256  ;;  %p587_p7 = scmp.lt.s32.totalorder %s398_s2, %s398_s2 }
  0x38   :  { %92 = vadd.xlane.f32.xlu0 %v91_v3  ;;  %470 = vmatpush3.msra.mxu1 %v220_v17  ;;  %p583_p6 = scmp.ne.s32.totalorder %s398_s2, %s582_s29  ;;  %p588_p8 = scmp.lt.s32.totalorder %s582_s29, %s582_s29 }
  0x39   :  { %460 = vmatprep.subr.mxu0 %v132_v18  ;;  %471 = vmatprep.subr.mxu1 %v219_v19 }
  0x3a   :  { %461 = vmatpush3.msra.mxu0 %v132_v18  ;;  %472 = vmatpush3.msra.mxu1 %v219_v19  ;;  %p589_p9 = por %p588_p8, %p587_p7 }
  0x3b   :  { %462 = vmatprep.subr.mxu0 %v131_v20  ;;  %473 = vmatprep.subr.mxu1 %v218_v21 }
  0x3c   :  { %463 = vmatpush3.msra.mxu0 %v131_v20  ;;  %474 = vmatpush3.msra.mxu1 %v218_v21  ;;  %p590_p10 = pnand %p589_p9, %p583_p6 }
  0x3d   :  { %478 = vmatprep.subr.mxu0 %v302_v22 }
  0xbd   :  { %v90_v4 = vpop.xlane.xlu0 %89 }
  0xbe   :  { %v95_v5 = vmul.f32 0.03125, %v90_v4 }
  0xc0   :  { %v97_v6 = vsub.f32 %v83_v0, %v95_v5 }
  0xc1   :  { %v93_v7 = vpop.xlane.xlu0 %92 }
  0xc2   :  { %v96_v8 = vmul.f32 0.03125, %v93_v7  ;;  %v99_v9 = vmul.f32 %v97_v6, %v97_v6 }
  0xc4   :  { %v98_v10 = vsub.f32 %v84_v1, %v96_v8  ;;  %v101_v11 = vsel %vm87_vm0, %v99_v9, 0.0 }
  0xc5   :  { %102 = vadd.xlane.f32.xlu1 %v101_v11 }
  0xc6   :  { %v100_v12 = vmul.f32 %v98_v10, %v98_v10 }
  0xc8   :  { %v104_v13 = vsel %vm87_vm0, %v100_v12, 0.0 }
  0xc9   :  { %105 = vadd.xlane.f32.xlu1 %v104_v13 }
 0x14e   :  { %v103_v23 = vpop.xlane.xlu1 %102 }
 0x14f   :  { %v107_v24 = vmul.f32 0.03125, %v103_v23 }
 0x151   :  { %v109_v25 = vadd.f32 1e-05, %v107_v24 }
 0x152   :  { %v106_v26 = vpop.xlane.xlu1 %105 }
 0x153   :  { %498 = vrsqrt.f32 %v109_v25  ;;  %v108_v27 = vmul.f32 0.03125, %v106_v26 }
 0x155   :  { %v110_v28 = vadd.f32 1e-05, %v108_v27 }
 0x157   :  { %500 = vrsqrt.f32 %v110_v28 }
 0x160   :  { %v499_v29 = vpop.eup %498 }
 0x161   :  { %v113_v31 = vmul.f32 %v499_v29, %v97_v6 }
 0x163   :  { %v121_v33 = vmul.f32 %v430_v30, %v113_v31 }
 0x164   :  { %v501_v34 = vpop.eup %500 }
 0x165   :  { %v114_v35 = vmul.f32 %v501_v34, %v98_v10  ;;  %v129_v36 = vadd.f32 %v431_v32, %v121_v33 }
 0x167   :  { %v122_v37 = vmul.f32 %v430_v30, %v114_v35  ;;  %464 = vmatprep.mubr.msk.f32.mxu0 %vm87_vm0, %v129_v36  ;;  %475 = vmatprep.mubr.msk.f32.mxu1 %vm87_vm0, %v129_v36 }
 0x169   :  { %v130_v38 = vadd.f32 %v431_v32, %v122_v37 }
 0x16b   :  { %465 = vmatmul.mubr.msk.f32.vlgmr.msra.gmra.mxu0 %vm87_vm0, %v130_v38  ;;  %476 = vmatmul.mubr.msk.f32.vlgmr.msra.gmra.mxu1 %vm87_vm0, %v130_v38 }
 0x16c   :  { %479 = vmatpush3.msra.mxu0 %v302_v22  ;;  %486 = vmatprep.mubr.msk.f32.mxu0 %vm87_vm0, %v129_v36 }
 0x16d   :  { %480 = vmatprep.subr.mxu0 %v301_v39 }
 0x16e   :  { %481 = vmatpush3.msra.mxu0 %v301_v39 }
 0x16f   :  { %482 = vmatprep.subr.mxu0 %v300_v40 }
 0x170   :  { %483 = vmatpush3.msra.mxu0 %v300_v40 }
 0x171   :  { %484 = vmatprep.subr.mxu0 %v299_v41 }
 0x172   :  { %485 = vmatpush3.msra.mxu0 %v299_v41 }
 0x173   :  { %487 = vmatmul.mubr.msk.f32.vlgmr.msra.gmra.mxu0 %vm87_vm0, %v130_v38 }
 0x22b   :  { %v466_v42 = vpop.f32.mrf.mxu0  ;;  %v477_v43 = vpop.f32.mrf.mxu1 }
 0x22c   :  { %217 = vst.msk [vmem:[#allocation10 + $0x8] sm:$0xff] %vm87_vm0, %v466_v42  ;;  %298 = vst.msk [vmem:[#allocation11 + $0x8] sm:$0xff] %vm87_vm0, %v477_v43 }
 0x22d   :  { %v207_v44 = vpop.f32.mrf.mxu0  ;;  %v288_v45 = vpop.f32.mrf.mxu1 }
 0x22e   :  { %216 = vst.msk [vmem:[#allocation10] sm:$0xff] %vm87_vm0, %v207_v44  ;;  %297 = vst.msk [vmem:[#allocation11] sm:$0xff] %vm87_vm0, %v288_v45 }
 0x22f   :  { %593 = shalt.err (!%p590_p10)
}
 0x230   :  { %403 = dma.vmem_to_hbm [thread:$0]  %s398_s2, 256, %s777_s7, [#allocation12], %s654_s10, %s654_s10, %s655_s11  }
 0x231   :  { %s602_s12 = scalar_lea.vmem %s386_s28, 256  ;;  %p607_p12 = scmp.lt.s32.totalorder %s386_s28, %s386_s28 }
 0x232   :  { %p603_p11 = scmp.ne.s32.totalorder %s386_s28, %s602_s12  ;;  %p608_p13 = scmp.lt.s32.totalorder %s602_s12, %s602_s12 }
 0x234   :  { %p609_p0 = por %p608_p13, %p607_p12 }
 0x236   :  { %p610_p1 = pnand %p609_p0, %p603_p11 }
 0x238   :  { %613 = shalt.err (!%p610_p1)
}
 0x239   :  { %391 = dma.vmem_to_hbm [thread:$0]  %s386_s28, 256, %s776_s6, [#allocation4], %s654_s10, %s654_s10, %s655_s11   ;;  %v488_v46 = vpop.f32.mrf.mxu0 }
 0x23a   :  { %s660_s15 = smov [#allocation13]   ;;  %379 = vst.msk [vmem:[#allocation13 + $0x8] sm:$0xff] %vm87_vm0, %v488_v46 }
 0x23b   :  { %s409_s16 = sshll.u32 %s660_s15, 4  ;;  %v369_v47 = vpop.f32.mrf.mxu0  ;;  %s410_s16 = int_to_ptr.vmem [resolvable:$true] %s409_s16 }
 0x23c   :  { %378 = vst.msk [vmem:[#allocation13] sm:$0xff] %vm87_vm0, %v369_v47  ;;  %s622_s7 = scalar_lea.vmem %s410_s16, 256  ;;  %p627_p3 = scmp.lt.s32.totalorder %s410_s16, %s410_s16 }
 0x23d   :  { %p623_p2 = scmp.ne.s32.totalorder %s410_s16, %s622_s7  ;;  %p628_p4 = scmp.lt.s32.totalorder %s622_s7, %s622_s7 }
 0x23f   :  { %p629_p5 = por %p628_p4, %p627_p3 }
 0x241   :  { %p630_p6 = pnand %p629_p5, %p623_p2 }
 0x243   :  { %633 = shalt.err (!%p630_p6)
}
 0x244   :  { %415 = dma.vmem_to_hbm [thread:$0]  %s410_s16, 256, %s778_s8, [#allocation12], %s654_s10, %s654_s10, %s655_s11  }
 0x245   :  { %648 = dma.done.wait [#allocation4], 256  }
 0x246   :  { %649 = vsyncadd [#allocation4], 4294967040 }
 0x247   :  { %650 = dma.done.wait [#allocation12], 512  }
 0x248   :  { %651 = vsyncadd [#allocation12], 4294966784 }
 0x249   :  { %425 = vsyncpa [#allocation3], 1 }
 0x24a   :  { %426 = vsyncpa [#allocation6], 1 }
 0x24b   :  { %427 = vsyncpa [#allocation9], 1 }
 0x24c   :  { %428 = vsyncpa [#allocation4], 1 }
 0x24d   :  { %429 = vsyncpa [#allocation12], 1 }

</bundles_post_ra>
